<compile_context>
chip_gen: v7x
topology: tpu7x:2x2x1
jax: 0.10.0
libtpu: 0.0.40
codegen_flags: <defaults>
</compile_context>

<pallas_src>
import jax
import jax.numpy as jnp
from jax.experimental import pallas as pl
from jax.experimental.pallas import tpu as pltpu

LN_EPS = 1e-5  # torch.nn.LayerNorm default eps


def _make_kernel(d_real, mxu_dtype):
    """Kernel over grid (row_tiles, 2 shared-weight blocks, B-contraction chunks)."""
    inv_d = 1.0 / float(d_real)

    def kernel(x_ref, w1_ref, b1_ref, w2_ref, dvec_ref, o_ref, acc_ref, h_ref):
        blk = pl.program_id(1)          # 0 / 1: the two (shared-weight) MLP+LN blocks
        k = pl.program_id(2)            # bottleneck (B) contraction chunk
        nk = pl.num_programs(2)

        @pl.when(k == 0)
        def _():
            acc_ref[...] = jnp.zeros_like(acc_ref)

        # h_ref holds the current block's input: x for block 0 (copied once per row
        # tile, so no f32 copy of x stays live across the whole kernel), or block 0's
        # LayerNorm output for block 1.
        @pl.when((blk == 0) & (k == 0))
        def _():
            h_ref[...] = x_ref[...].astype(jnp.float32)

        def to_mxu(a):
            return a if mxu_dtype is None else a.astype(mxu_dtype)

        # Linear(D -> B) chunk + ReLU. Chunking the bottleneck dim is exact: the bias
        # add and ReLU are per-column.
        z = jnp.dot(to_mxu(h_ref[...]), w1_ref[...],
                    preferred_element_type=jnp.float32)
        z = jnp.maximum(z + b1_ref[...].astype(jnp.float32), 0.0)
        # Linear(B -> D) chunk, accumulated in f32.
        acc_ref[...] += jnp.dot(to_mxu(z), w2_ref[...],
                                preferred_element_type=jnp.float32)

        @pl.when(k == nk - 1)
        def _():
            b2 = dvec_ref[0:1, :].astype(jnp.float32)
            g = dvec_ref[1:2, :].astype(jnp.float32)
            beta = dvec_ref[2:3, :].astype(jnp.float32)
            # Padded lanes of acc / b2 / gamma / beta are exactly zero, so sums over
            # the padded width equal sums over the real token_dim (divide by d_real).
            y = acc_ref[...] + b2
            s1 = jnp.sum(y, axis=-1, keepdims=True)
            s2 = jnp.sum(y * y, axis=-1, keepdims=True)
            mu = s1 * inv_d
            var = jnp.maximum(s2 * inv_d - mu * mu, 0.0)   # guard one-pass cancellation
            hn = (y - mu) * jax.lax.rsqrt(var + LN_EPS) * g + beta

            @pl.when(blk == 0)
            def _():
                h_ref[...] = hn          # becomes the input of the second shared block

            @pl.when(blk != 0)
            def _():
                # Residual add: re-read x from its resident input buffer.
                o_ref[...] = (hn + x_ref[...].astype(jnp.float32)).astype(o_ref.dtype)

    return kernel


def _vmem_limit_bytes():
    """Per-generation scoped-VMEM limit (~80% of per-core capacity)."""
    try:
        cap = int(pltpu.get_tpu_info().vmem_capacity_bytes)
    except Exception:
        cap = 64 << 20     # conservative default = v7x per-TensorCore VMEM
    return max(16 << 20, min(int(cap * 0.8), 100 << 20))


def _choose_tile_b(Bp, Dp, ts, w_bytes, x_bytes, budget):
    """Largest bottleneck tile (multiple of 128 dividing Bp) whose resident footprint
    fits `budget` bytes of VMEM."""
    def est(tb):
        nbuf = 1 if tb == Bp else 2                 # constant index -> single buffer
        wt = nbuf * 2 * Dp * tb * w_bytes           # w1 + w2 chunks
        xio = 2 * 2 * ts * Dp * x_bytes             # x and out row tiles, double-buffered
        scr = 2 * ts * Dp * 4                       # acc + h f32 scratch
        par = nbuf * 8 * tb * 4 + 8 * Dp * 4        # b1 chunk + (b2,g,beta) slab (8-sublane padded)
        mid = 4 * ts * max(tb, Dp) * 4              # f32 intermediates / spill headroom
        return wt + xio + scr + par + mid
    for tb in range(Bp, 127, -128):
        if Bp % tb == 0 and est(tb) <= budget:
            return tb
    return 128


def prepack_residual_mlp_params(w1, b1, w2, b2, gamma, beta, *,
                                weight_dtype=jnp.bfloat16):
    """One-time pad / layout / cast of the ResidualMLP parameters (do at init, NOT per step).

    Args (torch layouts):
      w1: (B, D)  nn.Linear(D->B).weight   b1: (B,)
      w2: (D, B)  nn.Linear(B->D).weight   b2, gamma, beta: (D,)
      weight_dtype: matmul weight dtype. bf16 recommended on all generations
        (v5e/v6e/v7x MXUs are bf16-native; halves weight HBM/VMEM bytes).  Use float32
        for exact-parity checks.
        # TODO(synk): fp8 (e4m3) weight path for v7x's fp8 MXU not implemented.
    """
    B, D = w1.shape
    Dp = max(128, ((D + 127) // 128) * 128)
    Bp = max(128, ((B + 127) // 128) * 128)

    # x @ W layouts, zero-padded so padded lanes stay exactly zero through both blocks.
    w1_xw = jnp.pad(jnp.asarray(w1).T, ((0, Dp - D), (0, Bp - B)))   # (Dp, Bp)
    w2_xw = jnp.pad(jnp.asarray(w2).T, ((0, Bp - B), (0, Dp - D)))   # (Bp, Dp)
    if jnp.dtype(weight_dtype) != jnp.dtype(jnp.float32):
        w1_xw = w1_xw.astype(weight_dtype)
        w2_xw = w2_xw.astype(weight_dtype)
        mxu_dtype = weight_dtype
    else:
        mxu_dtype = None

    b1p = jnp.pad(jnp.asarray(b1, jnp.float32), (0, Bp - B)).reshape(1, Bp)
    dvec = jnp.stack([                                               # (3, Dp): b2, gamma, beta
        jnp.pad(jnp.asarray(b2, jnp.float32), (0, Dp - D)),
        jnp.pad(jnp.asarray(gamma, jnp.float32), (0, Dp - D)),
        jnp.pad(jnp.asarray(beta, jnp.float32), (0, Dp - D)),
    ], axis=0)

    return dict(w1=w1_xw, b1=b1p, w2=w2_xw, dvec=dvec,
                D=D, B=B, Dp=Dp, Bp=Bp, mxu_dtype=mxu_dtype)


def residual_mlp_forward(x, params, *, row_tile=None, tile_b=None):
    """ResidualMLP forward: x (S, D) -> (S, D), params from prepack_residual_mlp_params."""
    S, D = x.shape
    assert D == params["D"], "token_dim mismatch vs prepacked params"
    Dp, Bp = params["Dp"], params["Bp"]
    out_dtype = x.dtype

    # Row tiling: aim for >=2 row tiles when S allows so a v7x megacore can shard the
    # "parallel" axis across its two TensorCores (each TC then holds its own weight copy;
    # a wash if weight-DMA bound, a win otherwise).  v5e/v6e (1 TC) are unaffected.
    s_sub = ((S + 7) // 8) * 8
    if row_tile is None:
        ts = 8 if s_sub <= 8 else min(256, ((s_sub + 15) // 16) * 8)
    else:
        ts = ((row_tile + 7) // 8) * 8
    Sp = ((S + ts - 1) // ts) * ts

    # Only activations are padded per call; weights were pre-packed once at init.
    xp = jnp.pad(x, ((0, Sp - S), (0, Dp - D)))

    vmem_limit = _vmem_limit_bytes()
    w_bytes = jnp.dtype(params["w1"].dtype).itemsize
    if tile_b is None:
        tb = _choose_tile_b(Bp, Dp, ts, w_bytes, jnp.dtype(out_dtype).itemsize,
                            budget=int(vmem_limit * 0.6))
    else:
        tb = tile_b
    assert Bp % tb == 0 and tb % 128 == 0, "tile_b must divide Bp and be lane-aligned"
    nk = Bp // tb

    kernel = _make_kernel(D, params["mxu_dtype"])
    grid = (Sp // ts, 2, nk)          # rows ("parallel"), shared-weight block, B chunk
    weights_const = (nk == 1)         # weight index_maps constant -> fetched once

    def build(use_single_buffering):
        def spec(shape, imap, constant):
            if constant and use_single_buffering:
                # Grid-invariant operand: fetched once, no need for double buffering.
                return pl.BlockSpec(shape, imap, pipeline_mode=pl.Buffered(1))
            return pl.BlockSpec(shape, imap)

        in_specs = [
            pl.BlockSpec((ts, Dp), lambda i, b, k: (i, 0)),          # x row tile
            spec((Dp, tb), lambda i, b, k: (0, k), weights_const),   # w1 chunk (x@W layout)
            spec((1, tb), lambda i, b, k: (0, k), weights_const),    # b1 chunk
            spec((tb, Dp), lambda i, b, k: (k, 0), weights_const),   # w2 chunk (x@W layout)
            spec((3, Dp), lambda i, b, k: (0, 0), True),             # [b2; gamma; beta] slab
        ]
        return pl.pallas_call(
            kernel,
            out_shape=jax.ShapeDtypeStruct((Sp, Dp), out_dtype),
            grid=grid,
            in_specs=in_specs,
            out_specs=pl.BlockSpec((ts, Dp), lambda i, b, k: (i, 0)),
            scratch_shapes=[pltpu.VMEM((ts, Dp), jnp.float32),   # acc: y before LayerNorm
                            pltpu.VMEM((ts, Dp), jnp.float32)],  # h: current block input
            compiler_params=pltpu.CompilerParams(
                dimension_semantics=("parallel", "arbitrary", "arbitrary"),
                vmem_limit_bytes=vmem_limit,
            ),
        )

    args = (xp, params["w1"], params["b1"], params["w2"], params["dvec"])
    try:
        out_p = build(True)(*args)
    except Exception:
        # Fallback if this jax build rejects pl.Buffered(1) on pallas_call operands;
        # identical semantics, just default double-buffering of the params.
        out_p = build(False)(*args)

    return out_p[:S, :D]


def reference_forward(x, w1, b1, w2, b2, gamma, beta):
    """Pure-JAX reference (f32 math, HIGHEST matmul precision to match true-f32 MXU)."""
    hi = jax.lax.Precision.HIGHEST
    def block(h):
        z = jnp.maximum(jnp.dot(h, w1.T, precision=hi) + b1, 0.0)
        y = jnp.dot(z, w2.T, precision=hi) + b2
        mu = jnp.mean(y, axis=-1, keepdims=True)
        var = jnp.mean((y - mu) ** 2, axis=-1, keepdims=True)
        return (y - mu) / jnp.sqrt(var + LN_EPS) * gamma + beta
    return block(block(x)) + x


if __name__ == "__main__":
    # ResidualMLP config (MLP path): token_dim D, encoder_bottleneck_size B,
    # encoder_num_layers=2 (shared weights applied twice), encoder_dropout=0.0,
    # encoder_layer_norm=True, residual=True.  Input: (num_virtual_tokens S, D).

    # --- Test 1: small prompt-tuning shapes, whole bottleneck resident (nk == 1). ---
    S, D, B = 8, 32, 16
    ks = jax.random.split(jax.random.PRNGKey(0), 5)
    x = jax.random.normal(ks[0], (S, D), dtype=jnp.float32)
    # torch.nn.Linear weight layout: (out_features, in_features)
    w1 = jax.random.uniform(ks[1], (B, D), jnp.float32, -1.0, 1.0) / jnp.sqrt(D)
    b1 = jax.random.uniform(ks[2], (B,), jnp.float32, -1.0, 1.0) / jnp.sqrt(D)
    w2 = jax.random.uniform(ks[3], (D, B), jnp.float32, -1.0, 1.0) / jnp.sqrt(B)
    b2 = jax.random.uniform(ks[4], (D,), jnp.float32, -1.0, 1.0) / jnp.sqrt(B)
    gamma = jnp.ones((D,), jnp.float32)   # torch LayerNorm default init
    beta = jnp.zeros((D,), jnp.float32)
    ref = reference_forward(x, w1, b1, w2, b2, gamma, beta)

    # f32 weights: parity check (Pallas f32 matmul is true f32 on the MXU).
    params_f32 = prepack_residual_mlp_params(w1, b1, w2, b2, gamma, beta,
                                             weight_dtype=jnp.float32)
    out = jax.block_until_ready(residual_mlp_forward(x, params_f32))
    assert out.shape == (S, D) and out.dtype == jnp.float32
    assert jnp.allclose(out, ref, atol=1e-3, rtol=1e-3), "f32 mismatch vs reference"

    # bf16 weights (default, recommended on v5e/v6e/v7x).  Note: the shared-weight block
    # is applied twice, so bf16 rounding compounds across both applications.
    params_bf16 = prepack_residual_mlp_params(w1, b1, w2, b2, gamma, beta)
    out_bf = jax.block_until_ready(residual_mlp_forward(x, params_bf16))
    assert out_bf.shape == (S, D)
    assert float(jnp.max(jnp.abs(out_bf - ref))) < 0.2, "bf16 path diverged"

    # --- Test 2: exercise B-contraction tiling (nk > 1) and multiple row tiles. ---
    S2, D2, B2 = 40, 256, 384
    ks2 = jax.random.split(jax.random.PRNGKey(1), 5)
    x2 = jax.random.normal(ks2[0], (S2, D2), dtype=jnp.float32)
    w1b = jax.random.uniform(ks2[1], (B2, D2), jnp.float32, -1.0, 1.0) / jnp.sqrt(D2)
    b1b = jax.random.uniform(ks2[2], (B2,), jnp.float32, -1.0, 1.0) / jnp.sqrt(D2)
    w2b = jax.random.uniform(ks2[3], (D2, B2), jnp.float32, -1.0, 1.0) / jnp.sqrt(B2)
    b2b = jax.random.uniform(ks2[4], (D2,), jnp.float32, -1.0, 1.0) / jnp.sqrt(B2)
    g2 = jnp.ones((D2,), jnp.float32)
    bt2 = jnp.zeros((D2,), jnp.float32)
    ref2 = reference_forward(x2, w1b, b1b, w2b, b2b, g2, bt2)

    params2 = prepack_residual_mlp_params(w1b, b1b, w2b, b2b, g2, bt2,
                                          weight_dtype=jnp.float32)
    out2 = jax.block_until_ready(
        residual_mlp_forward(x2, params2, row_tile=16, tile_b=128))
    assert out2.shape == (S2, D2)
    assert jnp.allclose(out2, ref2, atol=2e-3, rtol=2e-3), "tiled path mismatch"

    print("KERNEL_OK")
</pallas_src>

<mosaic_0001>
module attributes {stable_mosaic.version = 11 : i64} {
  func.func @kernel(%arg0: i32, %arg1: i32, %arg2: i32, %arg3: memref<8x128xf32, #tpu.memory_space<vmem>>, %arg4: memref<128x128xf32, #tpu.memory_space<vmem>>, %arg5: memref<1x128xf32, #tpu.memory_space<vmem>>, %arg6: memref<128x128xf32, #tpu.memory_space<vmem>>, %arg7: memref<3x128xf32, #tpu.memory_space<vmem>>, %arg8: memref<8x128xf32, #tpu.memory_space<vmem>>, %arg9: memref<8x128xf32, #tpu.memory_space<vmem>>, %arg10: memref<8x128xf32, #tpu.memory_space<vmem>>) attributes {dimension_semantics = [#tpu.dimension_semantics<parallel>, #tpu.dimension_semantics<arbitrary>, #tpu.dimension_semantics<arbitrary>], iteration_bounds = array<i64: 1, 2, 1>, scalar_prefetch = 0 : i64, scratch_operands = 2 : i64, tpu.core_type = #tpu.core_type<tc>, window_params = [{transform_indices = @transform_0, window_bounds = array<i64: 8, 128>}, {pipeline_mode = #tpu.pipeline_mode<synchronous>, transform_indices = @transform_1, window_bounds = array<i64: 128, 128>}, {pipeline_mode = #tpu.pipeline_mode<synchronous>, transform_indices = @transform_2, window_bounds = array<i64: 1, 128>}, {pipeline_mode = #tpu.pipeline_mode<synchronous>, transform_indices = @transform_3, window_bounds = array<i64: 128, 128>}, {pipeline_mode = #tpu.pipeline_mode<synchronous>, transform_indices = @transform_4, window_bounds = array<i64: 3, 128>}, {transform_indices = @transform_5, window_bounds = array<i64: 8, 128>}]} {
    %c0_i32 = arith.constant 0 : i32
    %0 = arith.cmpi eq, %arg2, %c0_i32 : i32
    %1 = arith.extui %0 : i1 to i32
    %c0_i32_0 = arith.constant 0 : i32
    %2 = arith.cmpi ne, %1, %c0_i32_0 : i32
    scf.if %2 {
      %cst_19 = arith.constant 0.000000e+00 : f32
      %24 = vector.broadcast %cst_19 : f32 to vector<8x128xf32>
      %c0_20 = arith.constant 0 : index
      %c0_21 = arith.constant 0 : index
      %25 = vector.load %arg9[%c0_20, %c0_21] : memref<8x128xf32, #tpu.memory_space<vmem>>, vector<8x128xf32>
      tpu.vector_store %arg9[%c0_20, %c0_21], %24 {strides = array<i32>} : memref<8x128xf32, #tpu.memory_space<vmem>>, vector<8x128xf32>,
    } else {
    }
    %c0_i32_1 = arith.constant 0 : i32
    %3 = arith.cmpi eq, %arg1, %c0_i32_1 : i32
    %c0_i32_2 = arith.constant 0 : i32
    %4 = arith.cmpi eq, %arg2, %c0_i32_2 : i32
    %5 = arith.andi %3, %4 : i1
    %6 = arith.extui %5 : i1 to i32
    %c0_i32_3 = arith.constant 0 : i32
    %7 = arith.cmpi ne, %6, %c0_i32_3 : i32
    scf.if %7 {
      %c0_19 = arith.constant 0 : index
      %c0_20 = arith.constant 0 : index
      %24 = vector.load %arg3[%c0_19, %c0_20] : memref<8x128xf32, #tpu.memory_space<vmem>>, vector<8x128xf32>
      %c0_21 = arith.constant 0 : index
      %c0_22 = arith.constant 0 : index
      %25 = vector.load %arg10[%c0_21, %c0_22] : memref<8x128xf32, #tpu.memory_space<vmem>>, vector<8x128xf32>
      tpu.vector_store %arg10[%c0_21, %c0_22], %24 {strides = array<i32>} : memref<8x128xf32, #tpu.memory_space<vmem>>, vector<8x128xf32>,
    } else {
    }
    %c0 = arith.constant 0 : index
    %c0_4 = arith.constant 0 : index
    %8 = vector.load %arg10[%c0, %c0_4] : memref<8x128xf32, #tpu.memory_space<vmem>>, vector<8x128xf32>
    %c0_5 = arith.constant 0 : index
    %c0_6 = arith.constant 0 : index
    %9 = vector.load %arg4[%c0_5, %c0_6] : memref<128x128xf32, #tpu.memory_space<vmem>>, vector<128x128xf32>
    %cst = arith.constant dense<0.000000e+00> : vector<8x128xf32>
    %10 = tpu.matmul %8, %9, %cst {dimension_numbers = #tpu.dot_dimension_numbers<[1], [0], [0], [1], [0, 0, 1, 1], [], []>} : vector<8x128xf32>, vector<128x128xf32>, vector<8x128xf32> -> vector<8x128xf32>
    %c0_7 = arith.constant 0 : index
    %c0_8 = arith.constant 0 : index
    %11 = vector.load %arg5[%c0_7, %c0_8] : memref<1x128xf32, #tpu.memory_space<vmem>>, vector<1x128xf32>
    %12 = vector.broadcast %11 : vector<1x128xf32> to vector<8x128xf32>
    %13 = arith.addf %10, %12 : vector<8x128xf32>
    %cst_9 = arith.constant 0.000000e+00 : f32
    %14 = vector.broadcast %cst_9 : f32 to vector<8x128xf32>
    %15 = arith.maximumf %13, %14 : vector<8x128xf32>
    %c0_10 = arith.constant 0 : index
    %c0_11 = arith.constant 0 : index
    %16 = vector.load %arg9[%c0_10, %c0_11] : memref<8x128xf32, #tpu.memory_space<vmem>>, vector<8x128xf32>
    %c0_12 = arith.constant 0 : index
    %c0_13 = arith.constant 0 : index
    %17 = vector.load %arg6[%c0_12, %c0_13] : memref<128x128xf32, #tpu.memory_space<vmem>>, vector<128x128xf32>
    %cst_14 = arith.constant dense<0.000000e+00> : vector<8x128xf32>
    %18 = tpu.matmul %15, %17, %cst_14 {dimension_numbers = #tpu.dot_dimension_numbers<[1], [0], [0], [1], [0, 0, 1, 1], [], []>} : vector<8x128xf32>, vector<128x128xf32>, vector<8x128xf32> -> vector<8x128xf32>
    %19 = arith.addf %16, %18 : vector<8x128xf32>
    %c0_15 = arith.constant 0 : index
    %c0_16 = arith.constant 0 : index
    %20 = vector.load %arg9[%c0_15, %c0_16] : memref<8x128xf32, #tpu.memory_space<vmem>>, vector<8x128xf32>
    tpu.vector_store %arg9[%c0_15, %c0_16], %19 {strides = array<i32>} : memref<8x128xf32, #tpu.memory_space<vmem>>, vector<8x128xf32>,
    %c0_i32_17 = arith.constant 0 : i32
    %21 = arith.cmpi eq, %arg2, %c0_i32_17 : i32
    %22 = arith.extui %21 : i1 to i32
    %c0_i32_18 = arith.constant 0 : i32
    %23 = arith.cmpi ne, %22, %c0_i32_18 : i32
    scf.if %23 {
      %c0_19 = arith.constant 0 : index
      %c0_20 = arith.constant 0 : index
      %24 = vector.load %arg7[%c0_19, %c0_20] : memref<3x128xf32, #tpu.memory_space<vmem>>, vector<1x128xf32>
      %c1 = arith.constant 1 : index
      %c0_21 = arith.constant 0 : index
      %25 = vector.load %arg7[%c1, %c0_21] : memref<3x128xf32, #tpu.memory_space<vmem>>, vector<1x128xf32>
      %c2 = arith.constant 2 : index
      %c0_22 = arith.constant 0 : index
      %26 = vector.load %arg7[%c2, %c0_22] : memref<3x128xf32, #tpu.memory_space<vmem>>, vector<1x128xf32>
      %c0_23 = arith.constant 0 : index
      %c0_24 = arith.constant 0 : index
      %27 = vector.load %arg9[%c0_23, %c0_24] : memref<8x128xf32, #tpu.memory_space<vmem>>, vector<8x128xf32>
      %28 = vector.broadcast %24 : vector<1x128xf32> to vector<8x128xf32>
      %29 = arith.addf %27, %28 : vector<8x128xf32>
      %cst_25 = arith.constant dense<0.000000e+00> : vector<8xf32>
      %30 = vector.multi_reduction <add>, %29, %cst_25 [1] : vector<8x128xf32> to vector<8xf32>
      %31 = vector.shape_cast %30 : vector<8xf32> to vector<8x1xf32>
      %32 = arith.mulf %29, %29 : vector<8x128xf32>
      %cst_26 = arith.constant dense<0.000000e+00> : vector<8xf32>
      %33 = vector.multi_reduction <add>, %32, %cst_26 [1] : vector<8x128xf32> to vector<8xf32>
      %34 = vector.shape_cast %33 : vector<8xf32> to vector<8x1xf32>
      %cst_27 = arith.constant 3.125000e-02 : f32
      %35 = vector.broadcast %cst_27 : f32 to vector<8x1xf32>
      %36 = arith.mulf %31, %35 : vector<8x1xf32>
      %cst_28 = arith.constant 3.125000e-02 : f32
      %37 = vector.broadcast %cst_28 : f32 to vector<8x1xf32>
      %38 = arith.mulf %34, %37 : vector<8x1xf32>
      %39 = arith.mulf %36, %36 : vector<8x1xf32>
      %40 = arith.subf %38, %39 : vector<8x1xf32>
      %cst_29 = arith.constant 0.000000e+00 : f32
      %41 = vector.broadcast %cst_29 : f32 to vector<8x1xf32>
      %42 = arith.maximumf %40, %41 : vector<8x1xf32>
      %43 = vector.broadcast %36 : vector<8x1xf32> to vector<8x128xf32>
      %44 = arith.subf %29, %43 : vector<8x128xf32>
      %cst_30 = arith.constant 9.99999974E-6 : f32
      %45 = vector.broadcast %cst_30 : f32 to vector<8x1xf32>
      %46 = arith.addf %42, %45 : vector<8x1xf32>
      %47 = math.rsqrt %46 : vector<8x1xf32>
      %48 = vector.broadcast %47 : vector<8x1xf32> to vector<8x128xf32>
      %49 = arith.mulf %44, %48 : vector<8x128xf32>
      %50 = vector.broadcast %25 : vector<1x128xf32> to vector<8x128xf32>
      %51 = arith.mulf %49, %50 : vector<8x128xf32>
      %52 = vector.broadcast %26 : vector<1x128xf32> to vector<8x128xf32>
      %53 = arith.addf %51, %52 : vector<8x128xf32>
      %c0_i32_31 = arith.constant 0 : i32
      %54 = arith.cmpi eq, %arg1, %c0_i32_31 : i32
      %55 = arith.extui %54 : i1 to i32
      %c0_i32_32 = arith.constant 0 : i32
      %56 = arith.cmpi ne, %55, %c0_i32_32 : i32
      scf.if %56 {
        %c0_35 = arith.constant 0 : index
        %c0_36 = arith.constant 0 : index
        %60 = vector.load %arg10[%c0_35, %c0_36] : memref<8x128xf32, #tpu.memory_space<vmem>>, vector<8x128xf32>
        tpu.vector_store %arg10[%c0_35, %c0_36], %53 {strides = array<i32>} : memref<8x128xf32, #tpu.memory_space<vmem>>, vector<8x128xf32>,
      } else {
      }
      %c0_i32_33 = arith.constant 0 : i32
      %57 = arith.cmpi ne, %arg1, %c0_i32_33 : i32
      %58 = arith.extui %57 : i1 to i32
      %c0_i32_34 = arith.constant 0 : i32
      %59 = arith.cmpi ne, %58, %c0_i32_34 : i32
      scf.if %59 {
        %c0_35 = arith.constant 0 : index
        %c0_36 = arith.constant 0 : index
        %60 = vector.load %arg3[%c0_35, %c0_36] : memref<8x128xf32, #tpu.memory_space<vmem>>, vector<8x128xf32>
        %61 = arith.addf %53, %60 : vector<8x128xf32>
        %c0_37 = arith.constant 0 : index
        %c0_38 = arith.constant 0 : index
        %62 = vector.load %arg8[%c0_37, %c0_38] : memref<8x128xf32, #tpu.memory_space<vmem>>, vector<8x128xf32>
        tpu.vector_store %arg8[%c0_37, %c0_38], %61 {strides = array<i32>} : memref<8x128xf32, #tpu.memory_space<vmem>>, vector<8x128xf32>,
      } else {
      }
    } else {
    }
    return
  }
  func.func @transform_0(%arg0: i32, %arg1: i32, %arg2: i32) -> (i32, i32) {
    %c0_i32 = arith.constant 0 : i32
    %c0_i32_0 = arith.constant 0 : i32
    return %arg0, %c0_i32 : i32, i32
  }
  func.func @transform_1(%arg0: i32, %arg1: i32, %arg2: i32) -> (i32, i32) {
    %c0_i32 = arith.constant 0 : i32
    %c0_i32_0 = arith.constant 0 : i32
    return %c0_i32, %arg2 : i32, i32
  }
  func.func @transform_2(%arg0: i32, %arg1: i32, %arg2: i32) -> (i32, i32) {
    %c0_i32 = arith.constant 0 : i32
    %c0_i32_0 = arith.constant 0 : i32
    return %c0_i32, %arg2 : i32, i32
  }
  func.func @transform_3(%arg0: i32, %arg1: i32, %arg2: i32) -> (i32, i32) {
    %c0_i32 = arith.constant 0 : i32
    %c0_i32_0 = arith.constant 0 : i32
    return %arg2, %c0_i32 : i32, i32
  }
  func.func @transform_4(%arg0: i32, %arg1: i32, %arg2: i32) -> (i32, i32) {
    %c0_i32 = arith.constant 0 : i32
    %c0_i32_0 = arith.constant 0 : i32
    %c0_i32_1 = arith.constant 0 : i32
    return %c0_i32, %c0_i32_0 : i32, i32
  }
  func.func @transform_5(%arg0: i32, %arg1: i32, %arg2: i32) -> (i32, i32) {
    %c0_i32 = arith.constant 0 : i32
    %c0_i32_0 = arith.constant 0 : i32
    return %arg0, %c0_i32 : i32, i32
  }
}

module attributes {stable_mosaic.version = 11 : i64} {
  func.func @kernel(%arg0: i32, %arg1: i32, %arg2: i32, %arg3: memref<8x128xf32, #tpu.memory_space<vmem>>, %arg4: memref<128x128xf32, #tpu.memory_space<vmem>>, %arg5: memref<1x128xf32, #tpu.memory_space<vmem>>, %arg6: memref<128x128xf32, #tpu.memory_space<vmem>>, %arg7: memref<3x128xf32, #tpu.memory_space<vmem>>, %arg8: memref<8x128xf32, #tpu.memory_space<vmem>>, %arg9: memref<8x128xf32, #tpu.memory_space<vmem>>, %arg10: memref<8x128xf32, #tpu.memory_space<vmem>>) attributes {dimension_semantics = [#tpu.dimension_semantics<parallel>, #tpu.dimension_semantics<arbitrary>, #tpu.dimension_semantics<arbitrary>], iteration_bounds = array<i64: 1, 2, 1>, scalar_prefetch = 0 : i64, scratch_operands = 2 : i64, tpu.core_type = #tpu.core_type<tc>, window_params = [{transform_indices = @transform_0, window_bounds = array<i64: 8, 128>}, {transform_indices = @transform_1, window_bounds = array<i64: 128, 128>}, {transform_indices = @transform_2, window_bounds = array<i64: 1, 128>}, {transform_indices = @transform_3, window_bounds = array<i64: 128, 128>}, {pipeline_mode = #tpu.pipeline_mode<synchronous>, transform_indices = @transform_4, window_bounds = array<i64: 3, 128>}, {transform_indices = @transform_5, window_bounds = array<i64: 8, 128>}]} {
    %c0_i32 = arith.constant 0 : i32
    %0 = arith.cmpi eq, %arg2, %c0_i32 : i32
    %1 = arith.extui %0 : i1 to i32
    %c0_i32_0 = arith.constant 0 : i32
    %2 = arith.cmpi ne, %1, %c0_i32_0 : i32
    scf.if %2 {
      %cst_19 = arith.constant 0.000000e+00 : f32
      %24 = vector.broadcast %cst_19 : f32 to vector<8x128xf32>
      %c0_20 = arith.constant 0 : index
      %c0_21 = arith.constant 0 : index
      %25 = vector.load %arg9[%c0_20, %c0_21] : memref<8x128xf32, #tpu.memory_space<vmem>>, vector<8x128xf32>
      tpu.vector_store %arg9[%c0_20, %c0_21], %24 {strides = array<i32>} : memref<8x128xf32, #tpu.memory_space<vmem>>, vector<8x128xf32>,
    } else {
    }
    %c0_i32_1 = arith.constant 0 : i32
    %3 = arith.cmpi eq, %arg1, %c0_i32_1 : i32
    %c0_i32_2 = arith.constant 0 : i32
    %4 = arith.cmpi eq, %arg2, %c0_i32_2 : i32
    %5 = arith.andi %3, %4 : i1
    %6 = arith.extui %5 : i1 to i32
    %c0_i32_3 = arith.constant 0 : i32
    %7 = arith.cmpi ne, %6, %c0_i32_3 : i32
    scf.if %7 {
      %c0_19 = arith.constant 0 : index
      %c0_20 = arith.constant 0 : index
      %24 = vector.load %arg3[%c0_19, %c0_20] : memref<8x128xf32, #tpu.memory_space<vmem>>, vector<8x128xf32>
      %c0_21 = arith.constant 0 : index
      %c0_22 = arith.constant 0 : index
      %25 = vector.load %arg10[%c0_21, %c0_22] : memref<8x128xf32, #tpu.memory_space<vmem>>, vector<8x128xf32>
      tpu.vector_store %arg10[%c0_21, %c0_22], %24 {strides = array<i32>} : memref<8x128xf32, #tpu.memory_space<vmem>>, vector<8x128xf32>,
    } else {
    }
    %c0 = arith.constant 0 : index
    %c0_4 = arith.constant 0 : index
    %8 = vector.load %arg10[%c0, %c0_4] : memref<8x128xf32, #tpu.memory_space<vmem>>, vector<8x128xf32>
    %c0_5 = arith.constant 0 : index
    %c0_6 = arith.constant 0 : index
    %9 = vector.load %arg4[%c0_5, %c0_6] : memref<128x128xf32, #tpu.memory_space<vmem>>, vector<128x128xf32>
    %cst = arith.constant dense<0.000000e+00> : vector<8x128xf32>
    %10 = tpu.matmul %8, %9, %cst {dimension_numbers = #tpu.dot_dimension_numbers<[1], [0], [0], [1], [0, 0, 1, 1], [], []>} : vector<8x128xf32>, vector<128x128xf32>, vector<8x128xf32> -> vector<8x128xf32>
    %c0_7 = arith.constant 0 : index
    %c0_8 = arith.constant 0 : index
    %11 = vector.load %arg5[%c0_7, %c0_8] : memref<1x128xf32, #tpu.memory_space<vmem>>, vector<1x128xf32>
    %12 = vector.broadcast %11 : vector<1x128xf32> to vector<8x128xf32>
    %13 = arith.addf %10, %12 : vector<8x128xf32>
    %cst_9 = arith.constant 0.000000e+00 : f32
    %14 = vector.broadcast %cst_9 : f32 to vector<8x128xf32>
    %15 = arith.maximumf %13, %14 : vector<8x128xf32>
    %c0_10 = arith.constant 0 : index
    %c0_11 = arith.constant 0 : index
    %16 = vector.load %arg9[%c0_10, %c0_11] : memref<8x128xf32, #tpu.memory_space<vmem>>, vector<8x128xf32>
    %c0_12 = arith.constant 0 : index
    %c0_13 = arith.constant 0 : index
    %17 = vector.load %arg6[%c0_12, %c0_13] : memref<128x128xf32, #tpu.memory_space<vmem>>, vector<128x128xf32>
    %cst_14 = arith.constant dense<0.000000e+00> : vector<8x128xf32>
    %18 = tpu.matmul %15, %17, %cst_14 {dimension_numbers = #tpu.dot_dimension_numbers<[1], [0], [0], [1], [0, 0, 1, 1], [], []>} : vector<8x128xf32>, vector<128x128xf32>, vector<8x128xf32> -> vector<8x128xf32>
    %19 = arith.addf %16, %18 : vector<8x128xf32>
    %c0_15 = arith.constant 0 : index
    %c0_16 = arith.constant 0 : index
    %20 = vector.load %arg9[%c0_15, %c0_16] : memref<8x128xf32, #tpu.memory_space<vmem>>, vector<8x128xf32>
    tpu.vector_store %arg9[%c0_15, %c0_16], %19 {strides = array<i32>} : memref<8x128xf32, #tpu.memory_space<vmem>>, vector<8x128xf32>,
    %c0_i32_17 = arith.constant 0 : i32
    %21 = arith.cmpi eq, %arg2, %c0_i32_17 : i32
    %22 = arith.extui %21 : i1 to i32
    %c0_i32_18 = arith.constant 0 : i32
    %23 = arith.cmpi ne, %22, %c0_i32_18 : i32
    scf.if %23 {
      %c0_19 = arith.constant 0 : index
      %c0_20 = arith.constant 0 : index
      %24 = vector.load %arg7[%c0_19, %c0_20] : memref<3x128xf32, #tpu.memory_space<vmem>>, vector<1x128xf32>
      %c1 = arith.constant 1 : index
      %c0_21 = arith.constant 0 : index
      %25 = vector.load %arg7[%c1, %c0_21] : memref<3x128xf32, #tpu.memory_space<vmem>>, vector<1x128xf32>
      %c2 = arith.constant 2 : index
      %c0_22 = arith.constant 0 : index
      %26 = vector.load %arg7[%c2, %c0_22] : memref<3x128xf32, #tpu.memory_space<vmem>>, vector<1x128xf32>
      %c0_23 = arith.constant 0 : index
      %c0_24 = arith.constant 0 : index
      %27 = vector.load %arg9[%c0_23, %c0_24] : memref<8x128xf32, #tpu.memory_space<vmem>>, vector<8x128xf32>
      %28 = vector.broadcast %24 : vector<1x128xf32> to vector<8x128xf32>
      %29 = arith.addf %27, %28 : vector<8x128xf32>
      %cst_25 = arith.constant dense<0.000000e+00> : vector<8xf32>
      %30 = vector.multi_reduction <add>, %29, %cst_25 [1] : vector<8x128xf32> to vector<8xf32>
      %31 = vector.shape_cast %30 : vector<8xf32> to vector<8x1xf32>
      %32 = arith.mulf %29, %29 : vector<8x128xf32>
      %cst_26 = arith.constant dense<0.000000e+00> : vector<8xf32>
      %33 = vector.multi_reduction <add>, %32, %cst_26 [1] : vector<8x128xf32> to vector<8xf32>
      %34 = vector.shape_cast %33 : vector<8xf32> to vector<8x1xf32>
      %cst_27 = arith.constant 3.125000e-02 : f32
      %35 = vector.broadcast %cst_27 : f32 to vector<8x1xf32>
      %36 = arith.mulf %31, %35 : vector<8x1xf32>
      %cst_28 = arith.constant 3.125000e-02 : f32
      %37 = vector.broadcast %cst_28 : f32 to vector<8x1xf32>
      %38 = arith.mulf %34, %37 : vector<8x1xf32>
      %39 = arith.mulf %36, %36 : vector<8x1xf32>
      %40 = arith.subf %38, %39 : vector<8x1xf32>
      %cst_29 = arith.constant 0.000000e+00 : f32
      %41 = vector.broadcast %cst_29 : f32 to vector<8x1xf32>
      %42 = arith.maximumf %40, %41 : vector<8x1xf32>
      %43 = vector.broadcast %36 : vector<8x1xf32> to vector<8x128xf32>
      %44 = arith.subf %29, %43 : vector<8x128xf32>
      %cst_30 = arith.constant 9.99999974E-6 : f32
      %45 = vector.broadcast %cst_30 : f32 to vector<8x1xf32>
      %46 = arith.addf %42, %45 : vector<8x1xf32>
      %47 = math.rsqrt %46 : vector<8x1xf32>
      %48 = vector.broadcast %47 : vector<8x1xf32> to vector<8x128xf32>
      %49 = arith.mulf %44, %48 : vector<8x128xf32>
      %50 = vector.broadcast %25 : vector<1x128xf32> to vector<8x128xf32>
      %51 = arith.mulf %49, %50 : vector<8x128xf32>
      %52 = vector.broadcast %26 : vector<1x128xf32> to vector<8x128xf32>
      %53 = arith.addf %51, %52 : vector<8x128xf32>
      %c0_i32_31 = arith.constant 0 : i32
      %54 = arith.cmpi eq, %arg1, %c0_i32_31 : i32
      %55 = arith.extui %54 : i1 to i32
      %c0_i32_32 = arith.constant 0 : i32
      %56 = arith.cmpi ne, %55, %c0_i32_32 : i32
      scf.if %56 {
        %c0_35 = arith.constant 0 : index
        %c0_36 = arith.constant 0 : index
        %60 = vector.load %arg10[%c0_35, %c0_36] : memref<8x128xf32, #tpu.memory_space<vmem>>, vector<8x128xf32>
        tpu.vector_store %arg10[%c0_35, %c0_36], %53 {strides = array<i32>} : memref<8x128xf32, #tpu.memory_space<vmem>>, vector<8x128xf32>,
      } else {
      }
      %c0_i32_33 = arith.constant 0 : i32
      %57 = arith.cmpi ne, %arg1, %c0_i32_33 : i32
      %58 = arith.extui %57 : i1 to i32
      %c0_i32_34 = arith.constant 0 : i32
      %59 = arith.cmpi ne, %58, %c0_i32_34 : i32
      scf.if %59 {
        %c0_35 = arith.constant 0 : index
        %c0_36 = arith.constant 0 : index
        %60 = vector.load %arg3[%c0_35, %c0_36] : memref<8x128xf32, #tpu.memory_space<vmem>>, vector<8x128xf32>
        %61 = arith.addf %53, %60 : vector<8x128xf32>
        %c0_37 = arith.constant 0 : index
        %c0_38 = arith.constant 0 : index
        %62 = vector.load %arg8[%c0_37, %c0_38] : memref<8x128xf32, #tpu.memory_space<vmem>>, vector<8x128xf32>
        tpu.vector_store %arg8[%c0_37, %c0_38], %61 {strides = array<i32>} : memref<8x128xf32, #tpu.memory_space<vmem>>, vector<8x128xf32>,
      } else {
      }
    } else {
    }
    return
  }
  func.func @transform_0(%arg0: i32, %arg1: i32, %arg2: i32) -> (i32, i32) {
    %c0_i32 = arith.constant 0 : i32
    %c0_i32_0 = arith.constant 0 : i32
    return %arg0, %c0_i32 : i32, i32
  }
  func.func @transform_1(%arg0: i32, %arg1: i32, %arg2: i32) -> (i32, i32) {
    %c0_i32 = arith.constant 0 : i32
    %c0_i32_0 = arith.constant 0 : i32
    return %c0_i32, %arg2 : i32, i32
  }
  func.func @transform_2(%arg0: i32, %arg1: i32, %arg2: i32) -> (i32, i32) {
    %c0_i32 = arith.constant 0 : i32
    %c0_i32_0 = arith.constant 0 : i32
    return %c0_i32, %arg2 : i32, i32
  }
  func.func @transform_3(%arg0: i32, %arg1: i32, %arg2: i32) -> (i32, i32) {
    %c0_i32 = arith.constant 0 : i32
    %c0_i32_0 = arith.constant 0 : i32
    return %arg2, %c0_i32 : i32, i32
  }
  func.func @transform_4(%arg0: i32, %arg1: i32, %arg2: i32) -> (i32, i32) {
    %c0_i32 = arith.constant 0 : i32
    %c0_i32_0 = arith.constant 0 : i32
    %c0_i32_1 = arith.constant 0 : i32
    return %c0_i32, %c0_i32_0 : i32, i32
  }
  func.func @transform_5(%arg0: i32, %arg1: i32, %arg2: i32) -> (i32, i32) {
    %c0_i32 = arith.constant 0 : i32
    %c0_i32_0 = arith.constant 0 : i32
    return %arg0, %c0_i32 : i32, i32
  }
}

</mosaic_0001>

<bundles_post_ra>
// kernel: tpu_custom_call.1
= control target key start
LH: loop header
LB: loop body
LE: loop exit
PB: predicated region body
PF: predicated region fallthrough
CT: control target
= control target key end

     0   :  { %10 = vsyncpa [#allocation5], 0  ;;  %s1263_s0 = inlined_call_operand.hbm [shape: f32[8,128], index: 0, kind: input, shape index: {}]   ;;  %s1264_s1 = inlined_call_operand.hbm [shape: f32[128,128], index: 1, kind: input, shape index: {}]   ;;  %s1265_s2 = inlined_call_operand.vmem [shape: f32[1,128], index: 2, kind: input, shape index: {}]   ;;  %s1266_s3 = inlined_call_operand.hbm [shape: f32[128,128], index: 3, kind: input, shape index: {}]   ;;  %s1267_s4 = inlined_call_operand.vmem [shape: f32[3,128], index: 4, kind: input, shape index: {}]   ;;  %s1268_s5 = inlined_call_operand.hbm [shape: f32[8,128], index: 5, kind: output, shape index: {}]  }
   0x1   :  { %11 = vsyncpa [#allocation8], 0 }
   0x2   :  { %12 = vsyncpa [#allocation6], 0  ;;  %s1064_s18 = smov 0   ;;  %s1066_s19 = smov 0  }
   0x3   :  { %s1068_s20 = smov 0  }
   0x4 LB: > { %s1025_s21 = smov [#allocation7]   ;;  %s636_s23 = sadd.s32 4294967295, %s1023_s20   ;;  %s1023_s20 = sphi %s1068_s20, %s18_s20   ;;  %s1019_s19 = sphi %s1066_s19, %s1281_s19   ;;  %s1015_s18 = sphi %s1064_s18, %s1280_s18  }
   0x5   : > { %s220_s22 = sshll.u32 %s1025_s21, 4  ;;  %p637_p0 = scmp.ge.s32.totalorder %s1023_s20, 1  ;;  %s1088_s22 = int_to_ptr.vmem [resolvable:$true] %s220_s22 }
   0x6   : > { %p193_p1 = scmp.lt.s32.totalorder %s1023_s20, 3  ;;  %p1084_p2 = scmp.eq.s32.totalorder %s636_s23, 0 }
   0x7   : > { %s33_s27 = sadd.s32 1, %s1019_s19  ;;  %s1026_s29 = smov [#allocation4]  }
   0x8   : > { %s1272_s24 = scalar_select %p1084_p2, 1, 0 }
   0x9   : > { %p1090_p3 = pnand %p637_p0, %p193_p1  ;;  %p1103_p6 = scmp.ge.s32.totalorder %s33_s27, 2 }
   0xa   : > { %s208_s30 = sshll.u32 %s1026_s29, 4  ;;  %s879_s8 = scalar_lea.hbm %s1264_s1, 2048  ;;  %s209_s30 = int_to_ptr.vmem [resolvable:$true] %s208_s30 }
   0xb   : > { %s1273_s25 = scalar_select %p1090_p3, 1, 0 }
   0xc   : > { %p826_p4 = pneg %p1090_p3  ;;  %p880_p7 = scmp.ne.s32.totalorder %s1264_s1, %s879_s8 }
   0xd   : > { %p886_p11 = scmp.lt.u32.totalorder %s879_s8, %s1264_s1 }
   0xe   : > { %p1098_p5 = pnand %p1084_p2, %p826_p4 }
  0x10   : > { %p1115_p8 = pneg %p1098_p5 }
  0x12   : > { %p882_p9 = pnand %p1115_p8, %p880_p7 }
  0x14   : > { %p883_p10 = pneg %p882_p9 }
  0x16   : > { %p888_p12 = pnand %p886_p11, %p883_p10 }
  0x18   : > { %891 = shalt.err (!%p888_p12)
}
  0x19   : > { %s892_s14 = scalar_lea.vmem %s1088_s22, 2048  ;;  %p900_p4 = scmp.lt.s32.totalorder %s1088_s22, %s1088_s22 }
  0x1a   : > { %p893_p13 = scmp.ne.s32.totalorder %s1088_s22, %s892_s14  ;;  %p901_p2 = scmp.lt.s32.totalorder %s892_s14, %s892_s14 }
  0x1c   : > { %p895_p0 = pnand %p893_p13, %p1115_p8  ;;  %p902_p7 = por %p901_p2, %p900_p4 }
  0x1e   : > { %p896_p1 = pneg %p895_p0 }
  0x20   : > { %p903_p9 = pnand %p902_p7, %p896_p1 }
  0x22   : > { %906 = shalt.err (!%p903_p9)
}
  0x23   : > { %s1027_s15 = smov 128   ;;  %s1028_s16 = smov 8  }
  0x24   : > { %832 = dma.hbm_to_vmem [thread:$0]  (!%p1098_p5), %s1264_s1, 2048, %s1088_s22, [#allocation8], %s1027_s15, %s1027_s15, %s1028_s16  }
  0x25   : > { %s1283_s27 = smov (%p1103_p6, %s33_s27), 0  ;;  %s907_s7 = scalar_lea.hbm %s1263_s0, 128 }
  0x26   : > { %p908_p2 = scmp.ne.s32.totalorder %s1263_s0, %s907_s7  ;;  %p914_p12 = scmp.lt.u32.totalorder %s907_s7, %s1263_s0 }
  0x28   : > { %p910_p10 = pnand %p908_p2, %p1115_p8 }
  0x2a   : > { %p911_p11 = pneg %p910_p10 }
  0x2c   : > { %p916_p13 = pnand %p914_p12, %p911_p11 }
  0x2e   : > { %919 = shalt.err (!%p916_p13)
}
  0x2f   : > { %s920_s22 = scalar_lea.vmem %s209_s30, 128  ;;  %p928_p4 = scmp.lt.s32.totalorder %s209_s30, %s209_s30 }
  0x30   : > { %p921_p6 = scmp.ne.s32.totalorder %s209_s30, %s920_s22  ;;  %p929_p7 = scmp.lt.s32.totalorder %s920_s22, %s920_s22 }
  0x32   : > { %p923_p0 = pnand %p921_p6, %p1115_p8  ;;  %p930_p9 = por %p929_p7, %p928_p4 }
  0x34   : > { %p924_p1 = pneg %p923_p0 }
  0x36   : > { %p931_p3 = pnand %p930_p9, %p924_p1 }
  0x38   : > { %934 = shalt.err (!%p931_p3)
}
  0x39   : > { %829 = dma.hbm_to_vmem [thread:$0]  (!%p1098_p5), %s1263_s0, 128, %s209_s30, [#allocation5]  }
  0x3a   : > { %s1029_s14 = smov [#allocation9]   ;;  %s935_s6 = scalar_lea.hbm %s1266_s3, 2048 }
  0x3b   : > { %s242_s17 = sshll.u32 %s1029_s14, 4  ;;  %p936_p2 = scmp.ne.s32.totalorder %s1266_s3, %s935_s6  ;;  %s243_s17 = int_to_ptr.vmem [resolvable:$true] %s242_s17 }
  0x3c   : > { %p942_p11 = scmp.lt.u32.totalorder %s935_s6, %s1266_s3 }
  0x3d   : > { %p938_p3 = pnand %p936_p2, %p1115_p8 }
  0x3f   : > { %p939_p10 = pneg %p938_p3 }
  0x41   : > { %p944_p12 = pnand %p942_p11, %p939_p10 }
  0x43   : > { %947 = shalt.err (!%p944_p12)
}
  0x44   : > { %s948_s30 = scalar_lea.vmem %s243_s17, 2048  ;;  %p956_p1 = scmp.lt.s32.totalorder %s243_s17, %s243_s17 }
  0x45   : > { %p949_p13 = scmp.ne.s32.totalorder %s243_s17, %s948_s30  ;;  %p957_p4 = scmp.lt.s32.totalorder %s948_s30, %s948_s30 }
  0x47   : > { %p951_p6 = pnand %p949_p13, %p1115_p8  ;;  %p958_p7 = por %p957_p4, %p956_p1 }
  0x49   : > { %p952_p0 = pneg %p951_p6 }
  0x4b   : > { %p959_p9 = pnand %p958_p7, %p952_p0 }
  0x4d   : > { %962 = shalt.err (!%p959_p9)
}
  0x4e   : > { %835 = dma.hbm_to_vmem [thread:$0]  (!%p1098_p5), %s1266_s3, 2048, %s243_s17, [#allocation8], %s1027_s15, %s1027_s15, %s1028_s16  }
  0x4f   : > { %p1277_p2 = scmp.ne.s32.totalorder %s1273_s25, 0 }
  0x50   : > { %p1278_p8 = scmp.ne.s32.totalorder (!%p1277_p2), %s1272_s24, 0 }
  0x51   : > { %261 = sbr.rel (%p1277_p2) target bundleno = 770 (0x302), region = 40 }
  0x58   : > { %1002 = dma.done.wait (%p1278_p8), [#allocation5], 128  }
  0x59   : > { %1004 = vsyncadd (%p1278_p8), [#allocation5], 4294967168 }
  0x5a   : > { %1006 = dma.done.wait (%p1278_p8), [#allocation8], 4096  }
  0x5b   : > { %1008 = vsyncadd (%p1278_p8), [#allocation8], 4294963200  ;;  %p299_p3 = scmp.eq.s32.totalorder %s1015_s18, 0  ;;  %v1030_v0 = vmov 0.0  }
  0x5c   : > { %298 = vst [vmem:[#allocation2] sm:$0xff] %v1030_v0  ;;  %v304_v1 = vld [vmem:[#allocation4] sm:$0xff] (%p299_p3) }
  0x5d   : > { %303 = sbr.rel (!%p299_p3) target bundleno = 100 (0x64), region = 60  ;;  %305 = vst [vmem:[#allocation3] sm:$0xff] (%p299_p3), %v304_v1 }
  0x64 PF: > { %v307_v2 = vld [vmem:[#allocation7] sm:$0xff]  ;;  %v308_v3 = vld [vmem:[#allocation7 + $0x8] sm:$0xff]  ;;  %v309_v4 = vld [vmem:[#allocation7 + $0x10] sm:$0xff]  ;;  %v1031_v5 = vmov 0.0|0.0   ;;  %vm1032_vm0 = vmmov 0   ;;  %p651_p5 = scmp.ne.s32.totalorder %s1015_s18, 0 }
  0x65   : > { %762 = vmatprep.subr.bf16.mxu0 %v1031_v5  ;;  %v763_v6 = vpack.c.bf16 %v308_v3, %v307_v2  ;;  %v310_v7 = vld [vmem:[#allocation7 + $0x18] sm:$0xff]  ;;  %724 = vmatprep.mubr.msk.f32.mxu0 %vm1032_vm0, %v1030_v0  ;;  %v311_v9 = vld [vmem:[#allocation7 + $0x20] sm:$0xff]  ;;  %v312_v10 = vld [vmem:[#allocation7 + $0x28] sm:$0xff] }
  0x66   : > { %786 = vmatprep.subr.bf16.mxu1 %v1031_v5  ;;  %759 = vmatprep.mubr.msk.f32.mxu1 %vm1032_vm0, %v1030_v0  ;;  %v766_v8 = vpack.c.bf16 %v310_v7, %v309_v4  ;;  %v402_v11 = vld [vmem:[#allocation9] sm:$0xff]  ;;  %v403_v12 = vld [vmem:[#allocation9 + $0x8] sm:$0xff]  ;;  %v404_v13 = vld [vmem:[#allocation9 + $0x10] sm:$0xff]  ;;  %v769_v15 = vpack.c.bf16 %v312_v10, %v311_v9 }
  0x67   : > { %764 = vmatpush3.bf16.msra.mxu0 %v763_v6  ;;  %v405_v14 = vld [vmem:[#allocation9 + $0x18] sm:$0xff]  ;;  %v787_v16 = vpack.c.bf16 %v403_v12, %v402_v11  ;;  %v313_v17 = vld [vmem:[#allocation7 + $0x30] sm:$0xff]  ;;  %v406_v20 = vld [vmem:[#allocation9 + $0x20] sm:$0xff] }
  0x68   : > { %765 = vmatprep.subr.bf16.mxu0 %v1031_v5  ;;  %v314_v18 = vld [vmem:[#allocation7 + $0x38] sm:$0xff]  ;;  %v790_v19 = vpack.c.bf16 %v405_v14, %v404_v13  ;;  %v407_v21 = vld [vmem:[#allocation9 + $0x28] sm:$0xff]  ;;  %v315_v23 = vld [vmem:[#allocation7 + $0x40] sm:$0xff] }
  0x69   : > { %788 = vmatpush3.bf16.msra.mxu1 %v787_v16  ;;  %v772_v22 = vpack.c.bf16 %v314_v18, %v313_v17  ;;  %v316_v24 = vld [vmem:[#allocation7 + $0x48] sm:$0xff]  ;;  %v793_v25 = vpack.c.bf16 %v407_v21, %v406_v20  ;;  %v408_v26 = vld [vmem:[#allocation9 + $0x30] sm:$0xff]  ;;  %v409_v27 = vld [vmem:[#allocation9 + $0x38] sm:$0xff] }
  0x6a   : > { %789 = vmatprep.subr.bf16.mxu1 %v1031_v5  ;;  %v775_v28 = vpack.c.bf16 %v316_v24, %v315_v23  ;;  %v317_v29 = vld [vmem:[#allocation7 + $0x50] sm:$0xff]  ;;  %v318_v30 = vld [vmem:[#allocation7 + $0x58] sm:$0xff]  ;;  %v796_v31 = vpack.c.bf16 %v409_v27, %v408_v26  ;;  %v410_v32 = vld [vmem:[#allocation9 + $0x40] sm:$0xff] }
  0x6b   : > { %767 = vmatpush3.bf16.msra.mxu0 %v766_v8  ;;  %v411_v33 = vld [vmem:[#allocation9 + $0x48] sm:$0xff]  ;;  %v778_v34 = vpack.c.bf16 %v318_v30, %v317_v29  ;;  %v319_v35 = vld [vmem:[#allocation7 + $0x60] sm:$0xff]  ;;  %v412_v38 = vld [vmem:[#allocation9 + $0x50] sm:$0xff] }
  0x6c   : > { %768 = vmatprep.subr.bf16.mxu0 %v1031_v5  ;;  %v320_v36 = vld [vmem:[#allocation7 + $0x68] sm:$0xff]  ;;  %v799_v37 = vpack.c.bf16 %v411_v33, %v410_v32  ;;  %v413_v39 = vld [vmem:[#allocation9 + $0x58] sm:$0xff]  ;;  %v321_v41 = vld [vmem:[#allocation7 + $0x70] sm:$0xff] }
  0x6d   : > { %791 = vmatpush3.bf16.msra.mxu1 %v790_v19  ;;  %v781_v40 = vpack.c.bf16 %v320_v36, %v319_v35  ;;  %v322_v42 = vld [vmem:[#allocation7 + $0x78] sm:$0xff]  ;;  %v802_v43 = vpack.c.bf16 %v413_v39, %v412_v38  ;;  %v414_v44 = vld [vmem:[#allocation9 + $0x60] sm:$0xff]  ;;  %v415_v45 = vld [vmem:[#allocation9 + $0x68] sm:$0xff] }
  0x6e   : > { %792 = vmatprep.subr.bf16.mxu1 %v1031_v5  ;;  %v784_v46 = vpack.c.bf16 %v322_v42, %v321_v41  ;;  %v805_v47 = vpack.c.bf16 %v415_v45, %v414_v44  ;;  %v306_v48 = vld [vmem:[#allocation3] sm:$0xff]  ;;  %v417_v50 = vld [vmem:[#allocation9 + $0x78] sm:$0xff]  ;;  %v647_v52 = vld [vmem:[%s1265_s2] ss:$0 sm:$0xff] }
  0x6f   : > { %770 = vmatpush3.bf16.msra.mxu0 %v769_v15  ;;  %v416_v49 = vld [vmem:[#allocation9 + $0x70] sm:$0xff]  ;;  %v401_v57 = vld [vmem:[#allocation2] sm:$0xff] }
  0x70   : > { %771 = vmatprep.subr.bf16.mxu0 %v1031_v5  ;;  %v808_v51 = vpack.c.bf16 %v417_v50, %v416_v49  ;;  %v648_v59 = vld [vmem:[%s1267_s4] ss:$0 sm:$0xff]  ;;  %v649_v10 = vld [vmem:[%s1267_s4 + $0x1] ss:$0 sm:$0xff]  ;;  %v650_v12 = vld [vmem:[%s1267_s4 + $0x2] ss:$0 sm:$0xff] }
  0x71   : > { %794 = vmatpush3.bf16.msra.mxu1 %v793_v25 }
  0x72   : > { %795 = vmatprep.subr.bf16.mxu1 %v1031_v5 }
  0x73   : > { %773 = vmatpush3.bf16.msra.mxu0 %v772_v22 }
  0x74   : > { %774 = vmatprep.subr.bf16.mxu0 %v1031_v5 }
  0x75   : > { %797 = vmatpush3.bf16.msra.mxu1 %v796_v31 }
  0x76   : > { %798 = vmatprep.subr.bf16.mxu1 %v1031_v5 }
  0x77   : > { %776 = vmatpush3.bf16.msra.mxu0 %v775_v28 }
  0x78   : > { %777 = vmatprep.subr.bf16.mxu0 %v1031_v5 }
  0x79   : > { %800 = vmatpush3.bf16.msra.mxu1 %v799_v37 }
  0x7a   : > { %801 = vmatprep.subr.bf16.mxu1 %v1031_v5 }
  0x7b   : > { %779 = vmatpush3.bf16.msra.mxu0 %v778_v34 }
  0x7c   : > { %780 = vmatprep.subr.bf16.mxu0 %v1031_v5 }
  0x7d   : > { %803 = vmatpush3.bf16.msra.mxu1 %v802_v43 }
  0x7e   : > { %804 = vmatprep.subr.bf16.mxu1 %v1031_v5 }
  0x7f   : > { %782 = vmatpush3.bf16.msra.mxu0 %v781_v40 }
  0x80   : > { %783 = vmatprep.subr.bf16.mxu0 %v1031_v5 }
  0x81   : > { %806 = vmatpush3.bf16.msra.mxu1 %v805_v47 }
  0x82   : > { %807 = vmatprep.subr.bf16.mxu1 %v1031_v5 }
  0x83   : > { %785 = vmatpush3.bf16.msra.mxu0 %v784_v46 }
  0x85   : > { %809 = vmatpush3.bf16.msra.mxu1 %v808_v51 }
  0x86   : > { %725 = vmatmul.mubr.f32.vlgmr.msra.gmra.mrb[0].mxu0 %v306_v48 }
 0x159   : > { %v396_v53 = vpop.f32.mrb[0].mxu0 }
 0x15a   : > { %v397_v54 = vadd.f32 %v647_v52, %v396_v53  ;;  %v726_v55 = vpop.f32.mrb[1].mxu0 }
 0x15c   : > { %v400_v56 = vmax.f32 %v397_v54, 0.0 }
 0x15e   : > { %760 = vmatmul.mubr.f32.vlgmr.msra.gmra.mrb[0].mxu1 %v400_v56 }
 0x231   : > { %v484_v58 = vpop.f32.mrb[0].mxu1 }
 0x232   : > { %v488_v60 = vadd.f32 %v484_v58, %v401_v57  ;;  %v761_v61 = vpop.f32.mrb[1].mxu1 }
 0x234   : > { %489 = vst [vmem:[#allocation2] sm:$0xff] %v488_v60  ;;  %v501_v62 = vadd.f32 %v648_v59, %v488_v60 }
 0x236   : > { %502 = vadd.xlane.f32.xlu0 %v501_v62  ;;  %v504_v63 = vmul.f32 %v501_v62, %v501_v62 }
 0x23a   : > { %505 = vadd.xlane.f32.xlu0 %v504_v63 }
 0x2c3   : > { %v503_v0 = vpop.xlane.xlu0 %502 }
 0x2c4   : > { %v507_v1 = vmul.f32 0.03125, %v503_v0 }
 0x2c6   : > { %v509_v3 = vmul.f32 %v507_v1, %v507_v1  ;;  %v512_v8 = vsub.f32 %v501_v62, %v507_v1 }
 0x2c7   : > { %v506_v2 = vpop.xlane.xlu0 %505 }
 0x2c8   : > { %v508_v4 = vmul.f32 0.03125, %v506_v2 }
 0x2ca   : > { %v510_v5 = vsub.f32 %v508_v4, %v509_v3 }
 0x2cc   : > { %v511_v6 = vmax.f32 %v510_v5, 0.0 }
 0x2ce   : > { %v513_v7 = vadd.f32 1e-05, %v511_v6 }
 0x2d0   : > { %877 = vrsqrt.f32 %v513_v7 }
 0x2d9   : > { %528 = sbr.rel (%p651_p5) target bundleno = 738 (0x2e2), region = 68 }
 0x2da   : > { %v878_v9 = vpop.eup %877 }
 0x2db   : > { %v515_v11 = vmul.f32 %v878_v9, %v512_v8 }
 0x2dd   : > { %v520_v13 = vmul.f32 %v649_v10, %v515_v11 }
 0x2df   : > { %v525_v14 = vadd.f32 %v650_v12, %v520_v13 }
 0x2e1   : > { %529 = vst [vmem:[#allocation3] sm:$0xff] %v525_v14 }
 0x2e2 PF: > { %533 = sbr.rel (%p299_p3) target bundleno = 745 (0x2e9), region = 72  ;;  %v534_v15 = vld [vmem:[#allocation4] sm:$0xff] (!%p299_p3) }
 0x2e3   : > { %v535_v16 = vadd.f32 (!%p299_p3), %v534_v15, %v525_v14 }
 0x2e5   : > { %536 = vst [vmem:[#allocation10] sm:$0xff] (!%p299_p3), %v535_v16 }
 0x2e9 PF: > { %p1228_p10 = scmp.eq.s32.totalorder %s636_s23, 1  ;;  %s1033_s17 = smov [#allocation10]  }
 0x2ea   : > { %s546_s21 = sshll.u32 %s1033_s17, 4  ;;  %s547_s21 = int_to_ptr.vmem [resolvable:$true] %s546_s21 }
 0x2eb   : > { %s963_s29 = scalar_lea.vmem %s547_s21, 128  ;;  %p970_p6 = scmp.lt.s32.totalorder %s547_s21, %s547_s21 }
 0x2ec   : > { %p964_p11 = scmp.ne.s32.totalorder %s547_s21, %s963_s29  ;;  %p971_p0 = scmp.lt.s32.totalorder %s963_s29, %s963_s29 }
 0x2ee   : > { %p965_p12 = pnand %p964_p11, %p1228_p10  ;;  %p972_p1 = por %p971_p0, %p970_p6 }
 0x2f0   : > { %p966_p13 = pneg %p965_p12 }
 0x2f2   : > { %p973_p4 = pnand %p972_p1, %p966_p13 }
 0x2f4   : > { %976 = shalt.err (!%p973_p4)
}
 0x2f5   : > { %s977_s23 = scalar_lea.hbm %s1268_s5, 128 }
 0x2f6   : > { %p978_p7 = scmp.ne.s32.totalorder %s1268_s5, %s977_s23  ;;  %p983_p8 = scmp.lt.u32.totalorder %s977_s23, %s1268_s5 }
 0x2f8   : > { %p979_p9 = pnand %p978_p7, %p1228_p10 }
 0x2fa   : > { %p980_p2 = pneg %p979_p9 }
 0x2fc   : > { %p985_p3 = pnand %p983_p8, %p980_p2 }
 0x2fe   : > { %988 = shalt.err (!%p985_p3)
}
 0x2ff   : > { %823 = dma.vmem_to_hbm [thread:$0]  (%p1228_p10), %s547_s21, 128, %s1268_s5, [#allocation6]  }
 0x300   : > { %1010 = dma.done.wait (%p1228_p10), [#allocation6], 128  }
 0x301   : > { %1012 = vsyncadd (%p1228_p10), [#allocation6], 4294967168 }
 0x302 PF: > { %s18_s20 = sadd.s32 1, %s1023_s20   ;;  %s1280_s18 = smov %s1019_s19 }
 0x303   : > { %p15_p5 = scmp.ge.s32.totalorder %s18_s20, 4   ;;  %s1281_s19 = smov %s1283_s27 }
 0x305   :  { %17 = sbr.rel (!%p15_p5) target bundleno = 4 (0x4), region = 104 }
 0x30c   :  { %559 = vsyncpa [#allocation5], 1 }
 0x30d   :  { %561 = vsyncpa [#allocation5 + $0x1], 1 }
 0x30e   :  { %562 = vsyncpa [#allocation8], 1 }
 0x30f   :  { %563 = vsyncpa [#allocation6], 1 }
 0x310   :  { %565 = vsyncpa [#allocation6 + $0x1], 1 }

// kernel: tpu_custom_call.1
= control target key start
LH: loop header
LB: loop body
LE: loop exit
PB: predicated region body
PF: predicated region fallthrough
CT: control target
= control target key end

     0   :  { %10 = vsyncpa [#allocation5], 0  ;;  %s1263_s0 = inlined_call_operand.hbm [shape: f32[8,128], index: 0, kind: input, shape index: {}]   ;;  %s1264_s1 = inlined_call_operand.hbm [shape: f32[128,128], index: 1, kind: input, shape index: {}]   ;;  %s1265_s2 = inlined_call_operand.vmem [shape: f32[1,128], index: 2, kind: input, shape index: {}]   ;;  %s1266_s3 = inlined_call_operand.hbm [shape: f32[128,128], index: 3, kind: input, shape index: {}]   ;;  %s1267_s4 = inlined_call_operand.vmem [shape: f32[3,128], index: 4, kind: input, shape index: {}]   ;;  %s1268_s5 = inlined_call_operand.hbm [shape: f32[8,128], index: 5, kind: output, shape index: {}]  }
   0x1   :  { %11 = vsyncpa [#allocation8], 0 }
   0x2   :  { %12 = vsyncpa [#allocation6], 0  ;;  %s1064_s18 = smov 0   ;;  %s1066_s19 = smov 0  }
   0x3   :  { %s1068_s20 = smov 0  }
   0x4 LB: > { %s1025_s21 = smov [#allocation7]   ;;  %s636_s23 = sadd.s32 4294967295, %s1023_s20   ;;  %s1023_s20 = sphi %s1068_s20, %s18_s20   ;;  %s1019_s19 = sphi %s1066_s19, %s1281_s19   ;;  %s1015_s18 = sphi %s1064_s18, %s1280_s18  }
   0x5   : > { %s220_s22 = sshll.u32 %s1025_s21, 4  ;;  %p637_p0 = scmp.ge.s32.totalorder %s1023_s20, 1  ;;  %s1088_s22 = int_to_ptr.vmem [resolvable:$true] %s220_s22 }
   0x6   : > { %p193_p1 = scmp.lt.s32.totalorder %s1023_s20, 3  ;;  %p1084_p2 = scmp.eq.s32.totalorder %s636_s23, 0 }
   0x7   : > { %s33_s27 = sadd.s32 1, %s1019_s19  ;;  %s1026_s29 = smov [#allocation4]  }
   0x8   : > { %s1272_s24 = scalar_select %p1084_p2, 1, 0 }
   0x9   : > { %p1090_p3 = pnand %p637_p0, %p193_p1  ;;  %p1103_p6 = scmp.ge.s32.totalorder %s33_s27, 2 }
   0xa   : > { %s208_s30 = sshll.u32 %s1026_s29, 4  ;;  %s879_s8 = scalar_lea.hbm %s1264_s1, 2048  ;;  %s209_s30 = int_to_ptr.vmem [resolvable:$true] %s208_s30 }
   0xb   : > { %s1273_s25 = scalar_select %p1090_p3, 1, 0 }
   0xc   : > { %p826_p4 = pneg %p1090_p3  ;;  %p880_p7 = scmp.ne.s32.totalorder %s1264_s1, %s879_s8 }
   0xd   : > { %p886_p11 = scmp.lt.u32.totalorder %s879_s8, %s1264_s1 }
   0xe   : > { %p1098_p5 = pnand %p1084_p2, %p826_p4 }
  0x10   : > { %p1115_p8 = pneg %p1098_p5 }
  0x12   : > { %p882_p9 = pnand %p1115_p8, %p880_p7 }
  0x14   : > { %p883_p10 = pneg %p882_p9 }
  0x16   : > { %p888_p12 = pnand %p886_p11, %p883_p10 }
  0x18   : > { %891 = shalt.err (!%p888_p12)
}
  0x19   : > { %s892_s14 = scalar_lea.vmem %s1088_s22, 2048  ;;  %p900_p4 = scmp.lt.s32.totalorder %s1088_s22, %s1088_s22 }
  0x1a   : > { %p893_p13 = scmp.ne.s32.totalorder %s1088_s22, %s892_s14  ;;  %p901_p2 = scmp.lt.s32.totalorder %s892_s14, %s892_s14 }
  0x1c   : > { %p895_p0 = pnand %p893_p13, %p1115_p8  ;;  %p902_p7 = por %p901_p2, %p900_p4 }
  0x1e   : > { %p896_p1 = pneg %p895_p0 }
  0x20   : > { %p903_p9 = pnand %p902_p7, %p896_p1 }
  0x22   : > { %906 = shalt.err (!%p903_p9)
}
  0x23   : > { %s1027_s15 = smov 128   ;;  %s1028_s16 = smov 8  }
  0x24   : > { %832 = dma.hbm_to_vmem [thread:$0]  (!%p1098_p5), %s1264_s1, 2048, %s1088_s22, [#allocation8], %s1027_s15, %s1027_s15, %s1028_s16  }
  0x25   : > { %s1283_s27 = smov (%p1103_p6, %s33_s27), 0  ;;  %s907_s7 = scalar_lea.hbm %s1263_s0, 128 }
  0x26   : > { %p908_p2 = scmp.ne.s32.totalorder %s1263_s0, %s907_s7  ;;  %p914_p12 = scmp.lt.u32.totalorder %s907_s7, %s1263_s0 }
  0x28   : > { %p910_p10 = pnand %p908_p2, %p1115_p8 }
  0x2a   : > { %p911_p11 = pneg %p910_p10 }
  0x2c   : > { %p916_p13 = pnand %p914_p12, %p911_p11 }
  0x2e   : > { %919 = shalt.err (!%p916_p13)
}
  0x2f   : > { %s920_s22 = scalar_lea.vmem %s209_s30, 128  ;;  %p928_p4 = scmp.lt.s32.totalorder %s209_s30, %s209_s30 }
  0x30   : > { %p921_p6 = scmp.ne.s32.totalorder %s209_s30, %s920_s22  ;;  %p929_p7 = scmp.lt.s32.totalorder %s920_s22, %s920_s22 }
  0x32   : > { %p923_p0 = pnand %p921_p6, %p1115_p8  ;;  %p930_p9 = por %p929_p7, %p928_p4 }
  0x34   : > { %p924_p1 = pneg %p923_p0 }
  0x36   : > { %p931_p3 = pnand %p930_p9, %p924_p1 }
  0x38   : > { %934 = shalt.err (!%p931_p3)
}
  0x39   : > { %829 = dma.hbm_to_vmem [thread:$0]  (!%p1098_p5), %s1263_s0, 128, %s209_s30, [#allocation5]  }
  0x3a   : > { %s1029_s14 = smov [#allocation9]   ;;  %s935_s6 = scalar_lea.hbm %s1266_s3, 2048 }
  0x3b   : > { %s242_s17 = sshll.u32 %s1029_s14, 4  ;;  %p936_p2 = scmp.ne.s32.totalorder %s1266_s3, %s935_s6  ;;  %s243_s17 = int_to_ptr.vmem [resolvable:$true] %s242_s17 }
  0x3c   : > { %p942_p11 = scmp.lt.u32.totalorder %s935_s6, %s1266_s3 }
  0x3d   : > { %p938_p3 = pnand %p936_p2, %p1115_p8 }
  0x3f   : > { %p939_p10 = pneg %p938_p3 }
  0x41   : > { %p944_p12 = pnand %p942_p11, %p939_p10 }
  0x43   : > { %947 = shalt.err (!%p944_p12)
}
  0x44   : > { %s948_s30 = scalar_lea.vmem %s243_s17, 2048  ;;  %p956_p1 = scmp.lt.s32.totalorder %s243_s17, %s243_s17 }
  0x45   : > { %p949_p13 = scmp.ne.s32.totalorder %s243_s17, %s948_s30  ;;  %p957_p4 = scmp.lt.s32.totalorder %s948_s30, %s948_s30 }
  0x47   : > { %p951_p6 = pnand %p949_p13, %p1115_p8  ;;  %p958_p7 = por %p957_p4, %p956_p1 }
  0x49   : > { %p952_p0 = pneg %p951_p6 }
  0x4b   : > { %p959_p9 = pnand %p958_p7, %p952_p0 }
  0x4d   : > { %962 = shalt.err (!%p959_p9)
}
  0x4e   : > { %835 = dma.hbm_to_vmem [thread:$0]  (!%p1098_p5), %s1266_s3, 2048, %s243_s17, [#allocation8], %s1027_s15, %s1027_s15, %s1028_s16  }
  0x4f   : > { %p1277_p2 = scmp.ne.s32.totalorder %s1273_s25, 0 }
  0x50   : > { %p1278_p8 = scmp.ne.s32.totalorder (!%p1277_p2), %s1272_s24, 0 }
  0x51   : > { %261 = sbr.rel (%p1277_p2) target bundleno = 770 (0x302), region = 40 }
  0x58   : > { %1002 = dma.done.wait (%p1278_p8), [#allocation5], 128  }
  0x59   : > { %1004 = vsyncadd (%p1278_p8), [#allocation5], 4294967168 }
  0x5a   : > { %1006 = dma.done.wait (%p1278_p8), [#allocation8], 4096  }
  0x5b   : > { %1008 = vsyncadd (%p1278_p8), [#allocation8], 4294963200  ;;  %p299_p3 = scmp.eq.s32.totalorder %s1015_s18, 0  ;;  %v1030_v0 = vmov 0.0  }
  0x5c   : > { %298 = vst [vmem:[#allocation2] sm:$0xff] %v1030_v0  ;;  %v304_v1 = vld [vmem:[#allocation4] sm:$0xff] (%p299_p3) }
  0x5d   : > { %303 = sbr.rel (!%p299_p3) target bundleno = 100 (0x64), region = 60  ;;  %305 = vst [vmem:[#allocation3] sm:$0xff] (%p299_p3), %v304_v1 }
  0x64 PF: > { %v307_v2 = vld [vmem:[#allocation7] sm:$0xff]  ;;  %v308_v3 = vld [vmem:[#allocation7 + $0x8] sm:$0xff]  ;;  %v309_v4 = vld [vmem:[#allocation7 + $0x10] sm:$0xff]  ;;  %v1031_v5 = vmov 0.0|0.0   ;;  %vm1032_vm0 = vmmov 0   ;;  %p651_p5 = scmp.ne.s32.totalorder %s1015_s18, 0 }
  0x65   : > { %762 = vmatprep.subr.bf16.mxu0 %v1031_v5  ;;  %v763_v6 = vpack.c.bf16 %v308_v3, %v307_v2  ;;  %v310_v7 = vld [vmem:[#allocation7 + $0x18] sm:$0xff]  ;;  %724 = vmatprep.mubr.msk.f32.mxu0 %vm1032_vm0, %v1030_v0  ;;  %v311_v9 = vld [vmem:[#allocation7 + $0x20] sm:$0xff]  ;;  %v312_v10 = vld [vmem:[#allocation7 + $0x28] sm:$0xff] }
  0x66   : > { %786 = vmatprep.subr.bf16.mxu1 %v1031_v5  ;;  %759 = vmatprep.mubr.msk.f32.mxu1 %vm1032_vm0, %v1030_v0  ;;  %v766_v8 = vpack.c.bf16 %v310_v7, %v309_v4  ;;  %v402_v11 = vld [vmem:[#allocation9] sm:$0xff]  ;;  %v403_v12 = vld [vmem:[#allocation9 + $0x8] sm:$0xff]  ;;  %v404_v13 = vld [vmem:[#allocation9 + $0x10] sm:$0xff]  ;;  %v769_v15 = vpack.c.bf16 %v312_v10, %v311_v9 }
  0x67   : > { %764 = vmatpush3.bf16.msra.mxu0 %v763_v6  ;;  %v405_v14 = vld [vmem:[#allocation9 + $0x18] sm:$0xff]  ;;  %v787_v16 = vpack.c.bf16 %v403_v12, %v402_v11  ;;  %v313_v17 = vld [vmem:[#allocation7 + $0x30] sm:$0xff]  ;;  %v406_v20 = vld [vmem:[#allocation9 + $0x20] sm:$0xff] }
  0x68   : > { %765 = vmatprep.subr.bf16.mxu0 %v1031_v5  ;;  %v314_v18 = vld [vmem:[#allocation7 + $0x38] sm:$0xff]  ;;  %v790_v19 = vpack.c.bf16 %v405_v14, %v404_v13  ;;  %v407_v21 = vld [vmem:[#allocation9 + $0x28] sm:$0xff]  ;;  %v315_v23 = vld [vmem:[#allocation7 + $0x40] sm:$0xff] }
  0x69   : > { %788 = vmatpush3.bf16.msra.mxu1 %v787_v16  ;;  %v772_v22 = vpack.c.bf16 %v314_v18, %v313_v17  ;;  %v316_v24 = vld [vmem:[#allocation7 + $0x48] sm:$0xff]  ;;  %v793_v25 = vpack.c.bf16 %v407_v21, %v406_v20  ;;  %v408_v26 = vld [vmem:[#allocation9 + $0x30] sm:$0xff]  ;;  %v409_v27 = vld [vmem:[#allocation9 + $0x38] sm:$0xff] }
  0x6a   : > { %789 = vmatprep.subr.bf16.mxu1 %v1031_v5  ;;  %v775_v28 = vpack.c.bf16 %v316_v24, %v315_v23  ;;  %v317_v29 = vld [vmem:[#allocation7 + $0x50] sm:$0xff]  ;;  %v318_v30 = vld [vmem:[#allocation7 + $0x58] sm:$0xff]  ;;  %v796_v31 = vpack.c.bf16 %v409_v27, %v408_v26  ;;  %v410_v32 = vld [vmem:[#allocation9 + $0x40] sm:$0xff] }
  0x6b   : > { %767 = vmatpush3.bf16.msra.mxu0 %v766_v8  ;;  %v411_v33 = vld [vmem:[#allocation9 + $0x48] sm:$0xff]  ;;  %v778_v34 = vpack.c.bf16 %v318_v30, %v317_v29  ;;  %v319_v35 = vld [vmem:[#allocation7 + $0x60] sm:$0xff]  ;;  %v412_v38 = vld [vmem:[#allocation9 + $0x50] sm:$0xff] }
  0x6c   : > { %768 = vmatprep.subr.bf16.mxu0 %v1031_v5  ;;  %v320_v36 = vld [vmem:[#allocation7 + $0x68] sm:$0xff]  ;;  %v799_v37 = vpack.c.bf16 %v411_v33, %v410_v32  ;;  %v413_v39 = vld [vmem:[#allocation9 + $0x58] sm:$0xff]  ;;  %v321_v41 = vld [vmem:[#allocation7 + $0x70] sm:$0xff] }
  0x6d   : > { %791 = vmatpush3.bf16.msra.mxu1 %v790_v19  ;;  %v781_v40 = vpack.c.bf16 %v320_v36, %v319_v35  ;;  %v322_v42 = vld [vmem:[#allocation7 + $0x78] sm:$0xff]  ;;  %v802_v43 = vpack.c.bf16 %v413_v39, %v412_v38  ;;  %v414_v44 = vld [vmem:[#allocation9 + $0x60] sm:$0xff]  ;;  %v415_v45 = vld [vmem:[#allocation9 + $0x68] sm:$0xff] }
  0x6e   : > { %792 = vmatprep.subr.bf16.mxu1 %v1031_v5  ;;  %v784_v46 = vpack.c.bf16 %v322_v42, %v321_v41  ;;  %v805_v47 = vpack.c.bf16 %v415_v45, %v414_v44  ;;  %v306_v48 = vld [vmem:[#allocation3] sm:$0xff]  ;;  %v417_v50 = vld [vmem:[#allocation9 + $0x78] sm:$0xff]  ;;  %v647_v52 = vld [vmem:[%s1265_s2] ss:$0 sm:$0xff] }
  0x6f   : > { %770 = vmatpush3.bf16.msra.mxu0 %v769_v15  ;;  %v416_v49 = vld [vmem:[#allocation9 + $0x70] sm:$0xff]  ;;  %v401_v57 = vld [vmem:[#allocation2] sm:$0xff] }
  0x70   : > { %771 = vmatprep.subr.bf16.mxu0 %v1031_v5  ;;  %v808_v51 = vpack.c.bf16 %v417_v50, %v416_v49  ;;  %v648_v59 = vld [vmem:[%s1267_s4] ss:$0 sm:$0xff]  ;;  %v649_v10 = vld [vmem:[%s1267_s4 + $0x1] ss:$0 sm:$0xff]  ;;  %v650_v12 = vld [vmem:[%s1267_s4 + $0x2] ss:$0 sm:$0xff] }
  0x71   : > { %794 = vmatpush3.bf16.msra.mxu1 %v793_v25 }
  0x72   : > { %795 = vmatprep.subr.bf16.mxu1 %v1031_v5 }
  0x73   : > { %773 = vmatpush3.bf16.msra.mxu0 %v772_v22 }
  0x74   : > { %774 = vmatprep.subr.bf16.mxu0 %v1031_v5 }
  0x75   : > { %797 = vmatpush3.bf16.msra.mxu1 %v796_v31 }
  0x76   : > { %798 = vmatprep.subr.bf16.mxu1 %v1031_v5 }
  0x77   : > { %776 = vmatpush3.bf16.msra.mxu0 %v775_v28 }
  0x78   : > { %777 = vmatprep.subr.bf16.mxu0 %v1031_v5 }
  0x79   : > { %800 = vmatpush3.bf16.msra.mxu1 %v799_v37 }
  0x7a   : > { %801 = vmatprep.subr.bf16.mxu1 %v1031_v5 }
  0x7b   : > { %779 = vmatpush3.bf16.msra.mxu0 %v778_v34 }
  0x7c   : > { %780 = vmatprep.subr.bf16.mxu0 %v1031_v5 }
  0x7d   : > { %803 = vmatpush3.bf16.msra.mxu1 %v802_v43 }
  0x7e   : > { %804 = vmatprep.subr.bf16.mxu1 %v1031_v5 }
  0x7f   : > { %782 = vmatpush3.bf16.msra.mxu0 %v781_v40 }
  0x80   : > { %783 = vmatprep.subr.bf16.mxu0 %v1031_v5 }
  0x81   : > { %806 = vmatpush3.bf16.msra.mxu1 %v805_v47 }
  0x82   : > { %807 = vmatprep.subr.bf16.mxu1 %v1031_v5 }
  0x83   : > { %785 = vmatpush3.bf16.msra.mxu0 %v784_v46 }
  0x85   : > { %809 = vmatpush3.bf16.msra.mxu1 %v808_v51 }
  0x86   : > { %725 = vmatmul.mubr.f32.vlgmr.msra.gmra.mrb[0].mxu0 %v306_v48 }
 0x159   : > { %v396_v53 = vpop.f32.mrb[0].mxu0 }
 0x15a   : > { %v397_v54 = vadd.f32 %v647_v52, %v396_v53  ;;  %v726_v55 = vpop.f32.mrb[1].mxu0 }
 0x15c   : > { %v400_v56 = vmax.f32 %v397_v54, 0.0 }
 0x15e   : > { %760 = vmatmul.mubr.f32.vlgmr.msra.gmra.mrb[0].mxu1 %v400_v56 }
 0x231   : > { %v484_v58 = vpop.f32.mrb[0].mxu1 }
 0x232   : > { %v488_v60 = vadd.f32 %v484_v58, %v401_v57  ;;  %v761_v61 = vpop.f32.mrb[1].mxu1 }
 0x234   : > { %489 = vst [vmem:[#allocation2] sm:$0xff] %v488_v60  ;;  %v501_v62 = vadd.f32 %v648_v59, %v488_v60 }
 0x236   : > { %502 = vadd.xlane.f32.xlu0 %v501_v62  ;;  %v504_v63 = vmul.f32 %v501_v62, %v501_v62 }
 0x23a   : > { %505 = vadd.xlane.f32.xlu0 %v504_v63 }
 0x2c3   : > { %v503_v0 = vpop.xlane.xlu0 %502 }
 0x2c4   : > { %v507_v1 = vmul.f32 0.03125, %v503_v0 }
 0x2c6   : > { %v509_v3 = vmul.f32 %v507_v1, %v507_v1  ;;  %v512_v8 = vsub.f32 %v501_v62, %v507_v1 }
 0x2c7   : > { %v506_v2 = vpop.xlane.xlu0 %505 }
 0x2c8   : > { %v508_v4 = vmul.f32 0.03125, %v506_v2 }
 0x2ca   : > { %v510_v5 = vsub.f32 %v508_v4, %v509_v3 }
 0x2cc   : > { %v511_v6 = vmax.f32 %v510_v5, 0.0 }
 0x2ce   : > { %v513_v7 = vadd.f32 1e-05, %v511_v6 }
 0x2d0   : > { %877 = vrsqrt.f32 %v513_v7 }
 0x2d9   : > { %528 = sbr.rel (%p651_p5) target bundleno = 738 (0x2e2), region = 68 }
 0x2da   : > { %v878_v9 = vpop.eup %877 }
 0x2db   : > { %v515_v11 = vmul.f32 %v878_v9, %v512_v8 }
 0x2dd   : > { %v520_v13 = vmul.f32 %v649_v10, %v515_v11 }
 0x2df   : > { %v525_v14 = vadd.f32 %v650_v12, %v520_v13 }
 0x2e1   : > { %529 = vst [vmem:[#allocation3] sm:$0xff] %v525_v14 }
 0x2e2 PF: > { %533 = sbr.rel (%p299_p3) target bundleno = 745 (0x2e9), region = 72  ;;  %v534_v15 = vld [vmem:[#allocation4] sm:$0xff] (!%p299_p3) }
 0x2e3   : > { %v535_v16 = vadd.f32 (!%p299_p3), %v534_v15, %v525_v14 }
 0x2e5   : > { %536 = vst [vmem:[#allocation10] sm:$0xff] (!%p299_p3), %v535_v16 }
 0x2e9 PF: > { %p1228_p10 = scmp.eq.s32.totalorder %s636_s23, 1  ;;  %s1033_s17 = smov [#allocation10]  }
 0x2ea   : > { %s546_s21 = sshll.u32 %s1033_s17, 4  ;;  %s547_s21 = int_to_ptr.vmem [resolvable:$true] %s546_s21 }
 0x2eb   : > { %s963_s29 = scalar_lea.vmem %s547_s21, 128  ;;  %p970_p6 = scmp.lt.s32.totalorder %s547_s21, %s547_s21 }
 0x2ec   : > { %p964_p11 = scmp.ne.s32.totalorder %s547_s21, %s963_s29  ;;  %p971_p0 = scmp.lt.s32.totalorder %s963_s29, %s963_s29 }
 0x2ee   : > { %p965_p12 = pnand %p964_p11, %p1228_p10  ;;  %p972_p1 = por %p971_p0, %p970_p6 }
 0x2f0   : > { %p966_p13 = pneg %p965_p12 }
 0x2f2   : > { %p973_p4 = pnand %p972_p1, %p966_p13 }
 0x2f4   : > { %976 = shalt.err (!%p973_p4)
}
 0x2f5   : > { %s977_s23 = scalar_lea.hbm %s1268_s5, 128 }
 0x2f6   : > { %p978_p7 = scmp.ne.s32.totalorder %s1268_s5, %s977_s23  ;;  %p983_p8 = scmp.lt.u32.totalorder %s977_s23, %s1268_s5 }
 0x2f8   : > { %p979_p9 = pnand %p978_p7, %p1228_p10 }
 0x2fa   : > { %p980_p2 = pneg %p979_p9 }
 0x2fc   : > { %p985_p3 = pnand %p983_p8, %p980_p2 }
 0x2fe   : > { %988 = shalt.err (!%p985_p3)
}
 0x2ff   : > { %823 = dma.vmem_to_hbm [thread:$0]  (%p1228_p10), %s547_s21, 128, %s1268_s5, [#allocation6]  }
 0x300   : > { %1010 = dma.done.wait (%p1228_p10), [#allocation6], 128  }
 0x301   : > { %1012 = vsyncadd (%p1228_p10), [#allocation6], 4294967168 }
 0x302 PF: > { %s18_s20 = sadd.s32 1, %s1023_s20   ;;  %s1280_s18 = smov %s1019_s19 }
 0x303   : > { %p15_p5 = scmp.ge.s32.totalorder %s18_s20, 4   ;;  %s1281_s19 = smov %s1283_s27 }
 0x305   :  { %17 = sbr.rel (!%p15_p5) target bundleno = 4 (0x4), region = 104 }
 0x30c   :  { %559 = vsyncpa [#allocation5], 1 }
 0x30d   :  { %561 = vsyncpa [#allocation5 + $0x1], 1 }
 0x30e   :  { %562 = vsyncpa [#allocation8], 1 }
 0x30f   :  { %563 = vsyncpa [#allocation6], 1 }
 0x310   :  { %565 = vsyncpa [#allocation6 + $0x1], 1 }

</bundles_post_ra>
